<compile_context>
chip_gen: v6e
topology: v6e:2x2x1
jax: 0.10.0
libtpu: 0.0.40
codegen_flags: <defaults>
</compile_context>

<pallas_src>
import jax
import jax.numpy as jnp
from jax.experimental import pallas as pl
from jax.experimental.pallas import tpu as pltpu


def _round_up(x, m):
    return ((x + m - 1) // m) * m


def _mlp_kernel(x_ref, w1_ref, b1_ref, w2_ref, b2_ref, w3_ref, b3_ref, o_ref):
    x = x_ref[...]                                              # (TB, in_f), act dtype
    h1 = jnp.dot(x, w1_ref[...], preferred_element_type=jnp.float32)
    h1 = jnp.maximum(h1 + b1_ref[...], 0.0)                     # (TB, h1) f32
    h2 = jnp.dot(h1.astype(w2_ref.dtype), w2_ref[...],
                 preferred_element_type=jnp.float32)
    h2 = jnp.maximum(h2 + b2_ref[...], 0.0)                     # (TB, h2) f32
    out = jnp.dot(h2.astype(w3_ref.dtype), w3_ref[...],
                  preferred_element_type=jnp.float32)
    o_ref[...] = (out + b3_ref[...]).astype(o_ref.dtype)        # (TB, out_f)


def ann_model_forward(x, params, *, tile_batch=4096,
                      activation_dtype=jnp.bfloat16):
    """x: (B, input_feature) float32.

    params: weights stored as (in, out), biases as (1, out), all float32.
    activation_dtype: dtype used for x and the matmul operands (bf16 default,
    halving the dominant HBM input stream); accumulation and output are f32.
    """
    w1, b1, w2, b2, w3, b3 = (
        params["w1"], params["b1"], params["w2"],
        params["b2"], params["w3"], params["b3"],
    )
    B, in_f = x.shape
    h1_f = w1.shape[1]
    h2_f = w2.shape[1]
    out_f = w3.shape[1]

    act = jnp.dtype(activation_dtype)
    # Weight casts are tiny (~2 KiB total) and constant-foldable under jit;
    # biases stay f32 (added to the f32 accumulators).
    xk = x.astype(act)
    w1k, w2k, w3k = w1.astype(act), w2.astype(act), w3.astype(act)

    # Batch tile: multiple of 8 sublanes, no bigger than the (padded) batch.
    tb = min(_round_up(tile_batch, 8), _round_up(B, 8))
    b_pad = _round_up(B, tb)
    xp = xk if b_pad == B else jnp.pad(xk, ((0, b_pad - B), (0, 0)))
    grid = (b_pad // tb,)

    weight_bytes = (xk.dtype.itemsize * (w1k.size + w2k.size + w3k.size)
                    + 4 * (b1.size + b2.size + b3.size))
    cost = pl.CostEstimate(
        flops=2 * b_pad * (in_f * h1_f + h1_f * h2_f + h2_f * out_f),
        transcendentals=0,
        bytes_accessed=(act.itemsize * b_pad * in_f      # input stream
                        + 4 * b_pad * out_f              # output stream (f32)
                        + weight_bytes),
    )

    out = pl.pallas_call(
        _mlp_kernel,
        out_shape=jax.ShapeDtypeStruct((b_pad, out_f), jnp.float32),
        grid=grid,
        in_specs=[
            pl.BlockSpec((tb, in_f), lambda i: (i, 0)),     # x: tiled over batch
            pl.BlockSpec((in_f, h1_f), lambda i: (0, 0)),   # weights/biases stay
            pl.BlockSpec((1, h1_f), lambda i: (0, 0)),      # resident in VMEM
            pl.BlockSpec((h1_f, h2_f), lambda i: (0, 0)),
            pl.BlockSpec((1, h2_f), lambda i: (0, 0)),
            pl.BlockSpec((h2_f, out_f), lambda i: (0, 0)),
            pl.BlockSpec((1, out_f), lambda i: (0, 0)),
        ],
        out_specs=pl.BlockSpec((tb, out_f), lambda i: (i, 0)),
        compiler_params=pltpu.CompilerParams(
            dimension_semantics=("parallel",),
            vmem_limit_bytes=32 * 1024 * 1024,
        ),
        cost_estimate=cost,
    )(xp, w1k, b1, w2k, b2, w3k, b3)

    return out if b_pad == B else out[:B]


def init_params(key, input_feature=8, hidden1=20, hidden2=20, out_features=2):
    """Deterministic init mimicking torch.nn.Linear default (U[-1/sqrt(fan_in), ...])."""
    ks = jax.random.split(key, 6)

    def lin(kw, kb, fan_in, fan_out):
        bound = 1.0 / jnp.sqrt(jnp.float32(fan_in))
        w = jax.random.uniform(kw, (fan_in, fan_out), jnp.float32, -bound, bound)
        b = jax.random.uniform(kb, (1, fan_out), jnp.float32, -bound, bound)
        return w, b

    w1, b1 = lin(ks[0], ks[1], input_feature, hidden1)
    w2, b2 = lin(ks[2], ks[3], hidden1, hidden2)
    w3, b3 = lin(ks[4], ks[5], hidden2, out_features)
    return {"w1": w1, "b1": b1, "w2": w2, "b2": b2, "w3": w3, "b3": b3}


def _reference_forward(x, p, dtype=jnp.float32):
    """Pure-JAX reference with the same dtype policy as the kernel."""
    w1, w2, w3 = p["w1"].astype(dtype), p["w2"].astype(dtype), p["w3"].astype(dtype)
    h1 = jnp.dot(x.astype(dtype), w1, preferred_element_type=jnp.float32)
    h1 = jnp.maximum(h1 + p["b1"], 0.0)
    h2 = jnp.dot(h1.astype(dtype), w2, preferred_element_type=jnp.float32)
    h2 = jnp.maximum(h2 + p["b2"], 0.0)
    return jnp.dot(h2.astype(dtype), w3, preferred_element_type=jnp.float32) + p["b3"]


if __name__ == "__main__":
    key = jax.random.PRNGKey(0)
    k_param, k_x = jax.random.split(key)

    batch, input_feature = 8, 8
    params = init_params(k_param, input_feature=input_feature,
                         hidden1=20, hidden2=20, out_features=2)
    x = jax.random.normal(k_x, (batch, input_feature), jnp.float32)

    # Default bf16-activation path vs a reference with the same dtype policy.
    out = jax.block_until_ready(ann_model_forward(x, params))
    ref = _reference_forward(x, params, dtype=jnp.bfloat16)
    assert out.shape == (batch, 2)
    assert jnp.allclose(out, ref, atol=2e-3, rtol=2e-3), "mismatch vs bf16 reference"

    # Full f32 path (exact original-module semantics) vs f32 reference.
    out32 = jax.block_until_ready(
        ann_model_forward(x, params, activation_dtype=jnp.float32))
    ref32 = _reference_forward(x, params, dtype=jnp.float32)
    assert jnp.allclose(out32, ref32, atol=1e-3, rtol=1e-3), "mismatch vs f32 reference"

    # Exercise multiple grid steps + batch padding (3000 rows, 512-row tiles).
    xb = jax.random.normal(k_x, (3000, input_feature), jnp.float32)
    outb = jax.block_until_ready(ann_model_forward(xb, params, tile_batch=512))
    refb = _reference_forward(xb, params, dtype=jnp.bfloat16)
    assert outb.shape == (3000, 2)
    assert jnp.allclose(outb, refb, atol=5e-3, rtol=5e-3), "mismatch on tiled batch"

    print("KERNEL_OK")
</pallas_src>

<mosaic_0001>
module attributes {stable_mosaic.version = 11 : i64} {
  func.func @_mlp_kernel(%arg0: i32, %arg1: memref<8x8xbf16, #tpu.memory_space<vmem>>, %arg2: memref<8x20xbf16, #tpu.memory_space<vmem>>, %arg3: memref<1x20xf32, #tpu.memory_space<vmem>>, %arg4: memref<20x20xbf16, #tpu.memory_space<vmem>>, %arg5: memref<1x20xf32, #tpu.memory_space<vmem>>, %arg6: memref<20x2xbf16, #tpu.memory_space<vmem>>, %arg7: memref<1x2xf32, #tpu.memory_space<vmem>>, %arg8: memref<8x2xf32, #tpu.memory_space<vmem>>) attributes {dimension_semantics = [#tpu.dimension_semantics<parallel>], iteration_bounds = array<i64: 1>, scalar_prefetch = 0 : i64, scratch_operands = 0 : i64, tpu.core_type = #tpu.core_type<tc>, window_params = [{transform_indices = @transform_0, window_bounds = array<i64: 8, 8>}, {pipeline_mode = #tpu.pipeline_mode<synchronous>, transform_indices = @transform_1, window_bounds = array<i64: 8, 20>}, {pipeline_mode = #tpu.pipeline_mode<synchronous>, transform_indices = @transform_2, window_bounds = array<i64: 1, 20>}, {pipeline_mode = #tpu.pipeline_mode<synchronous>, transform_indices = @transform_3, window_bounds = array<i64: 20, 20>}, {pipeline_mode = #tpu.pipeline_mode<synchronous>, transform_indices = @transform_4, window_bounds = array<i64: 1, 20>}, {pipeline_mode = #tpu.pipeline_mode<synchronous>, transform_indices = @transform_5, window_bounds = array<i64: 20, 2>}, {pipeline_mode = #tpu.pipeline_mode<synchronous>, transform_indices = @transform_6, window_bounds = array<i64: 1, 2>}, {transform_indices = @transform_7, window_bounds = array<i64: 8, 2>}]} {
    %c0 = arith.constant 0 : index
    %c0_0 = arith.constant 0 : index
    %0 = vector.load %arg1[%c0, %c0_0] : memref<8x8xbf16, #tpu.memory_space<vmem>>, vector<8x8xbf16>
    %c0_1 = arith.constant 0 : index
    %c0_2 = arith.constant 0 : index
    %1 = vector.load %arg2[%c0_1, %c0_2] : memref<8x20xbf16, #tpu.memory_space<vmem>>, vector<8x20xbf16>
    %cst = arith.constant dense<0.000000e+00> : vector<8x20xf32>
    %2 = tpu.matmul %0, %1, %cst {dimension_numbers = #tpu.dot_dimension_numbers<[1], [0], [0], [1], [0, 0, 1, 1], [], []>} : vector<8x8xbf16>, vector<8x20xbf16>, vector<8x20xf32> -> vector<8x20xf32>
    %c0_3 = arith.constant 0 : index
    %c0_4 = arith.constant 0 : index
    %3 = vector.load %arg3[%c0_3, %c0_4] : memref<1x20xf32, #tpu.memory_space<vmem>>, vector<1x20xf32>
    %4 = vector.broadcast %3 : vector<1x20xf32> to vector<8x20xf32>
    %5 = arith.addf %2, %4 : vector<8x20xf32>
    %cst_5 = arith.constant 0.000000e+00 : f32
    %6 = vector.broadcast %cst_5 : f32 to vector<8x20xf32>
    %7 = arith.maximumf %5, %6 : vector<8x20xf32>
    %8 = arith.truncf %7 : vector<8x20xf32> to vector<8x20xbf16>
    %c0_6 = arith.constant 0 : index
    %c0_7 = arith.constant 0 : index
    %9 = vector.load %arg4[%c0_6, %c0_7] : memref<20x20xbf16, #tpu.memory_space<vmem>>, vector<20x20xbf16>
    %cst_8 = arith.constant dense<0.000000e+00> : vector<8x20xf32>
    %10 = tpu.matmul %8, %9, %cst_8 {dimension_numbers = #tpu.dot_dimension_numbers<[1], [0], [0], [1], [0, 0, 1, 1], [], []>} : vector<8x20xbf16>, vector<20x20xbf16>, vector<8x20xf32> -> vector<8x20xf32>
    %c0_9 = arith.constant 0 : index
    %c0_10 = arith.constant 0 : index
    %11 = vector.load %arg5[%c0_9, %c0_10] : memref<1x20xf32, #tpu.memory_space<vmem>>, vector<1x20xf32>
    %12 = vector.broadcast %11 : vector<1x20xf32> to vector<8x20xf32>
    %13 = arith.addf %10, %12 : vector<8x20xf32>
    %cst_11 = arith.constant 0.000000e+00 : f32
    %14 = vector.broadcast %cst_11 : f32 to vector<8x20xf32>
    %15 = arith.maximumf %13, %14 : vector<8x20xf32>
    %16 = arith.truncf %15 : vector<8x20xf32> to vector<8x20xbf16>
    %c0_12 = arith.constant 0 : index
    %c0_13 = arith.constant 0 : index
    %17 = vector.load %arg6[%c0_12, %c0_13] : memref<20x2xbf16, #tpu.memory_space<vmem>>, vector<20x2xbf16>
    %cst_14 = arith.constant dense<0.000000e+00> : vector<8x2xf32>
    %18 = tpu.matmul %16, %17, %cst_14 {dimension_numbers = #tpu.dot_dimension_numbers<[1], [0], [0], [1], [0, 0, 1, 1], [], []>} : vector<8x20xbf16>, vector<20x2xbf16>, vector<8x2xf32> -> vector<8x2xf32>
    %c0_15 = arith.constant 0 : index
    %c0_16 = arith.constant 0 : index
    %19 = vector.load %arg7[%c0_15, %c0_16] : memref<1x2xf32, #tpu.memory_space<vmem>>, vector<1x2xf32>
    %20 = vector.broadcast %19 : vector<1x2xf32> to vector<8x2xf32>
    %21 = arith.addf %18, %20 : vector<8x2xf32>
    %c0_17 = arith.constant 0 : index
    %c0_18 = arith.constant 0 : index
    %22 = vector.load %arg8[%c0_17, %c0_18] : memref<8x2xf32, #tpu.memory_space<vmem>>, vector<8x2xf32>
    tpu.vector_store %arg8[%c0_17, %c0_18], %21 {strides = array<i32>} : memref<8x2xf32, #tpu.memory_space<vmem>>, vector<8x2xf32>,
    return
  }
  func.func @transform_0(%arg0: i32) -> (i32, i32) {
    %c0_i32 = arith.constant 0 : i32
    %c0_i32_0 = arith.constant 0 : i32
    return %arg0, %c0_i32 : i32, i32
  }
  func.func @transform_1(%arg0: i32) -> (i32, i32) {
    %c0_i32 = arith.constant 0 : i32
    %c0_i32_0 = arith.constant 0 : i32
    %c0_i32_1 = arith.constant 0 : i32
    return %c0_i32, %c0_i32_0 : i32, i32
  }
  func.func @transform_2(%arg0: i32) -> (i32, i32) {
    %c0_i32 = arith.constant 0 : i32
    %c0_i32_0 = arith.constant 0 : i32
    %c0_i32_1 = arith.constant 0 : i32
    return %c0_i32, %c0_i32_0 : i32, i32
  }
  func.func @transform_3(%arg0: i32) -> (i32, i32) {
    %c0_i32 = arith.constant 0 : i32
    %c0_i32_0 = arith.constant 0 : i32
    %c0_i32_1 = arith.constant 0 : i32
    return %c0_i32, %c0_i32_0 : i32, i32
  }
  func.func @transform_4(%arg0: i32) -> (i32, i32) {
    %c0_i32 = arith.constant 0 : i32
    %c0_i32_0 = arith.constant 0 : i32
    %c0_i32_1 = arith.constant 0 : i32
    return %c0_i32, %c0_i32_0 : i32, i32
  }
  func.func @transform_5(%arg0: i32) -> (i32, i32) {
    %c0_i32 = arith.constant 0 : i32
    %c0_i32_0 = arith.constant 0 : i32
    %c0_i32_1 = arith.constant 0 : i32
    return %c0_i32, %c0_i32_0 : i32, i32
  }
  func.func @transform_6(%arg0: i32) -> (i32, i32) {
    %c0_i32 = arith.constant 0 : i32
    %c0_i32_0 = arith.constant 0 : i32
    %c0_i32_1 = arith.constant 0 : i32
    return %c0_i32, %c0_i32_0 : i32, i32
  }
  func.func @transform_7(%arg0: i32) -> (i32, i32) {
    %c0_i32 = arith.constant 0 : i32
    %c0_i32_0 = arith.constant 0 : i32
    return %arg0, %c0_i32 : i32, i32
  }
}

</mosaic_0001>

<bundles_post_ra>
// kernel: tpu_custom_call.1
= control target key start
LH: loop header
LB: loop body
LE: loop exit
PB: predicated region body
PF: predicated region fallthrough
CT: control target
= control target key end

     0   :  { %12 = vsyncpa [#allocation3], 0  ;;  %s308_s24 = smov [#allocation2]   ;;  %s381_s0 = inlined_call_operand.vmem [shape: bf16[8,8], index: 0, kind: input, shape index: {}]   ;;  %s382_s1 = inlined_call_operand.hbm [shape: bf16[8,20], index: 1, kind: input, shape index: {}]   ;;  %s383_s2 = inlined_call_operand.vmem [shape: f32[1,20], index: 2, kind: input, shape index: {}]   ;;  %s384_s3 = inlined_call_operand.vmem [shape: bf16[20,20], index: 3, kind: input, shape index: {}]   ;;  %s385_s4 = inlined_call_operand.vmem [shape: f32[1,20], index: 4, kind: input, shape index: {}]   ;;  %s386_s5 = inlined_call_operand.vmem [shape: bf16[20,2], index: 5, kind: input, shape index: {}]   ;;  %s387_s6 = inlined_call_operand.vmem [shape: f32[1,2], index: 6, kind: input, shape index: {}]   ;;  %s388_s7 = inlined_call_operand.vmem [shape: f32[8,2], index: 7, kind: output, shape index: {}]  }
   0x1   :  { %s21_s25 = sshll.u32 %s308_s24, 4  ;;  %s22_s25 = int_to_ptr.vmem [resolvable:$true] %s21_s25 }
   0x2   :  { %s294_s26 = scalar_lea.vmem %s22_s25, 64  ;;  %p299_p1 = scmp.lt.s32.totalorder %s22_s25, %s22_s25 }
   0x3   :  { %p295_p0 = scmp.ne.s32.totalorder %s22_s25, %s294_s26  ;;  %p300_p2 = scmp.lt.s32.totalorder %s294_s26, %s294_s26 }
   0x5   :  { %p301_p3 = por %p300_p2, %p299_p1 }
   0x7   :  { %p302_p4 = pnand %p301_p3, %p295_p0 }
   0x9   :  { %305 = shalt.err (!%p302_p4)
}
   0xa   :  { %24 = dma.hbm_to_vmem [thread:$0]  %s382_s1, 64, %s22_s25, [#allocation3]  }
   0xb   :  { %306 = dma.done.wait [#allocation3], 64  }
   0xc   :  { %307 = vsyncadd [#allocation3], 4294967232  ;;  %v309_v0 = vmov 0.0   ;;  %vm310_vm0 = vmmov 0   ;;  %vm52_vm1 = vcmask 1043456   ;;  %vm48_vm2 = vcmask 64512  }
   0xd   :  { %257 = vmatprep.subr.bf16.mxu0 %v309_v0  ;;  %259 = vmatprep.mubr.msk.bf16.mxu0 %vm310_vm0, %v309_v0  ;;  %v40_v1 = vld [vmem:[#allocation2] sm:$0xf]  ;;  %v282_v4 = vld [vmem:[%s384_s3 + $0x8] ss:$0 sps:$4 sm:$0x33]   ;;  %vm121_vm3 = vcmask 1041408  }
   0xe   :  { %263 = vmatprep.subr.bf16.mxu1 %v309_v0  ;;  %267 = vmatprep.mubr.msk.bf16.mxu1 %vm310_vm0, %v309_v0  ;;  %v39_v2 = vld [vmem:[%s381_s0] sm:$0xf]  ;;  %v54_v3 = vsel %vm52_vm1, %v40_v1, 0  ;;  %v123_v5 = vsel %vm121_vm3, %v282_v4, 0  ;;  %vm117_vm4 = vcmask 162816   ;;  %vm232_vm5 = vcmask 15360  }
   0xf   :  { %258 = vmatpush3.bf16.msra.mxu0 %v54_v3  ;;  %264 = vmatpush3.bf16.msra.mxu1 %v123_v5  ;;  %v284_v6 = vld [vmem:[%s384_s3] sm:$0xff]   ;;  %v283_v7 = vld [vmem:[%s386_s5 + $0x8] ss:$0 sps:$4 sm:$0x33]  }
  0x10   :  { %271 = vmatprep.subr.bf16.mxu0 %v309_v0  ;;  %265 = vmatprep.subr.bf16.mxu1 %v309_v0  ;;  %v190_v8 = vsel %vm121_vm3, %v283_v7, 0  ;;  %v239_v9 = vld [vmem:[%s383_s2] ss:$0 sm:$0xff] }
  0x11   :  { %v285_v17 = vld [vmem:[%s386_s5] sm:$0xff]  }
  0x12   :  { %260 = vmatmul.mubr.msk.bf16.vlgmr.msra.gmra.mxu0 %vm48_vm2, %v39_v2  ;;  %v241_v18 = vld [vmem:[%s385_s4] ss:$0 sm:$0xff] }
  0x13   :  { %275 = vmatprep.mubr.msk.bf16.mxu0 %vm310_vm0, %v309_v0  ;;  %266 = vmatpush3.bf16.msra.mxu1 %v284_v6  ;;  %v245_v26 = vld [vmem:[%s387_s6] ss:$0 sm:$0xff] }
  0x14   :  { %272 = vmatpush3.bf16.msra.mxu0 %v190_v8 }
  0x15   :  { %273 = vmatprep.subr.bf16.mxu0 %v309_v0 }
  0x18   :  { %274 = vmatpush3.bf16.msra.mxu0 %v285_v17 }
  0xd2   :  { %v90_v10 = vpop.f32.mrf.mxu0 }
  0xd3   :  { %v91_v11 = vadd.f32 %v239_v9, %v90_v10 }
  0xd4   :  { %v261_v12 = vpop.f32.mrf.mxu0 }
  0xd5   :  { %v96_v13 = vmax.f32 %v91_v11, 0.0 }
  0xd6   :  { %v93_v14 = vpop.f32.mrf.mxu0 }
  0xd7   :  { %v97_v15 = vpack.c.bf16 %v96_v13, %v96_v13 }
  0xd8   :  { %v262_v16 = vpop.f32.mrf.mxu0 }
  0xd9   :  { %268 = vmatmul.mubr.msk.bf16.vlgmr.msra.gmra.mxu1 %vm117_vm4, %v97_v15 }
 0x199   :  { %v159_v19 = vpop.f32.mrf.mxu1 }
 0x19a   :  { %v160_v20 = vadd.f32 %v241_v18, %v159_v19 }
 0x19b   :  { %v269_v21 = vpop.f32.mrf.mxu1 }
 0x19c   :  { %v165_v22 = vmax.f32 %v160_v20, 0.0 }
 0x19d   :  { %v162_v23 = vpop.f32.mrf.mxu1 }
 0x19e   :  { %v166_v24 = vpack.c.bf16 %v165_v22, %v165_v22 }
 0x19f   :  { %v270_v25 = vpop.f32.mrf.mxu1 }
 0x1a0   :  { %276 = vmatmul.mubr.msk.bf16.vlgmr.msra.gmra.mxu0 %vm117_vm4, %v166_v24 }
 0x260   :  { %v226_v27 = vpop.f32.mrf.mxu0 }
 0x261   :  { %v227_v28 = vadd.f32 %v245_v26, %v226_v27 }
 0x262   :  { %v277_v29 = vpop.f32.mrf.mxu0 }
 0x263   :  { %233 = vst.msk [vmem:[%s388_s7] sm:$0xff] %vm232_vm5, %v227_v28 }
 0x264   :  { %v229_v30 = vpop.f32.mrf.mxu0 }
 0x266   :  { %v278_v31 = vpop.f32.mrf.mxu0 }
 0x267   :  { %238 = vsyncpa [#allocation3], 1 }

</bundles_post_ra>
